<compile_context>
chip_gen: v7x
topology: tpu7x:2x2x1
jax: 0.10.0
libtpu: 0.0.40
codegen_flags: <defaults>
</compile_context>

<pallas_src>
import jax
import jax.numpy as jnp
import numpy as np
from jax.experimental import pallas as pl
from jax.experimental.pallas import tpu as pltpu  # noqa: F401  (TPU backend)

B_INIT_VALUE = 0.1


# ----------------------------------------------------------------------------
# Slab layout (shared by prepare_params and the kernel): each section starts on
# an 8-row (sublane) boundary so in-kernel slices are aligned static windows.
# ----------------------------------------------------------------------------
def _r8(n):
    return -(-n // 8) * 8


def _layout(num_inputs, hidden, num_actions):
    def pack(*sections):
        off, out = 0, {}
        for name, rows in sections:
            out[name] = off
            off += _r8(rows)
        out["rows"] = off
        return out

    lstm = pack(("wih", num_inputs), ("whh", hidden), ("bg", 1))
    head = pack(("w1h", hidden), ("w1a", num_actions), ("b1", 1),
                ("w2", hidden), ("b2", 1), ("w3", 1), ("b3", 1))
    return lstm, head


# ----------------------------------------------------------------------------
# Fused kernel: LSTM (last hidden state) + concat-MLP Q-head.
# Operands: time-major flat inputs (T*B, I), action (B, A),
#           LSTM slab (rows, 4H), head slab (rows, H).
# ----------------------------------------------------------------------------
def _qmodel_kernel(x_ref, a_ref, lstm_ref, head_ref, o_ref):
    TB, I = x_ref.shape
    B, A = a_ref.shape
    H = lstm_ref.shape[1] // 4
    T = TB // B
    L, HD = _layout(I, H, A)

    # Weights loaded once via aligned static ref windows.
    wih = lstm_ref[L["wih"]:L["wih"] + I, :]        # (I, 4H)
    whh = lstm_ref[L["whh"]:L["whh"] + H, :]        # (H, 4H)
    b_g = lstm_ref[L["bg"]:L["bg"] + 1, :]          # (1, 4H) = b_ih + b_hh

    # (1) Hoisted, time-major input projection: ONE (T*B, I) @ (I, 4H) matmul
    #     plus the combined bias for all timesteps.
    gates_x = jnp.dot(x_ref[...], wih,
                      preferred_element_type=jnp.float32) + b_g   # (T*B, 4H)

    h = jnp.zeros((B, H), jnp.float32)
    c = jnp.zeros((B, H), jnp.float32)

    # (2) Fully unrolled recurrence (static T); h/c live in vregs.  The
    #     per-step gate slab is a contiguous leading-axis view (time-major),
    #     so no relayout sits on the serial dependency chain.
    # TODO(synk): for large T/H, stage gates_x in a VMEM scratch and switch to
    # lax.fori_loop(..., unroll=True) to bound vreg live ranges.
    for t in range(T):
        gates = gates_x[t * B:(t + 1) * B, :] + jnp.dot(
            h, whh, preferred_element_type=jnp.float32)            # (B, 4H)
        sig = jax.nn.sigmoid(gates)    # one EUP pass over the full 4H row
        tah = jnp.tanh(gates)          # one EUP pass over the full 4H row
        # PyTorch gate order: i, f, g, o
        i_g = sig[:, 0 * H:1 * H]
        f_g = sig[:, 1 * H:2 * H]
        g_g = tah[:, 2 * H:3 * H]
        o_g = sig[:, 3 * H:4 * H]
        c = f_g * c + i_g * g_g
        h = o_g * jnp.tanh(c)

    # (3) Fused MLP head; concat([h, action]) @ W1.T expressed as split matmul.
    w1h = head_ref[HD["w1h"]:HD["w1h"] + H, :]      # (H, H)
    w1a = head_ref[HD["w1a"]:HD["w1a"] + A, :]      # (A, H)
    b1 = head_ref[HD["b1"]:HD["b1"] + 1, :]         # (1, H)
    w2 = head_ref[HD["w2"]:HD["w2"] + H, :]         # (H, H)
    b2 = head_ref[HD["b2"]:HD["b2"] + 1, :]         # (1, H)
    w3 = head_ref[HD["w3"]:HD["w3"] + 1, :]         # (1, H)
    b3 = head_ref[HD["b3"]:HD["b3"] + 1, :][:, 0:1]  # (1, 1)

    z = (jnp.dot(h, w1h, preferred_element_type=jnp.float32)
         + jnp.dot(a_ref[...], w1a, preferred_element_type=jnp.float32)
         + b1)
    z = jnp.maximum(z, 0.0)
    z = jnp.maximum(
        jnp.dot(z, w2, preferred_element_type=jnp.float32) + b2, 0.0)
    # (4) Final H->1 projection as mul + lane reduction (no N=1 MXU pass).
    o_ref[...] = jnp.sum(z * w3, axis=-1, keepdims=True) + b3


def qmodel_forward(state, action, kp):
    """Pallas forward of QModel.forward(state, action).

    state: (B, T, num_inputs) batch-first (same as the PyTorch module);
    action: (B, num_actions); kp: kernel-ready slabs from prepare_params().
    """
    B, T, I = state.shape
    # Time-major flattening so the per-step gate slice inside the kernel is a
    # contiguous leading-axis view (done once in XLA, off the serial path).
    x_tm = jnp.transpose(state, (1, 0, 2)).reshape(T * B, I)
    return pl.pallas_call(
        _qmodel_kernel,
        out_shape=jax.ShapeDtypeStruct((B, 1), jnp.float32),
    )(x_tm, action, kp["lstm_slab"], kp["head_slab"])


# ----------------------------------------------------------------------------
# Parameter construction mirroring the PyTorch module __init__ (PyTorch layout),
# plus a one-time conversion to the two packed, kernel-ready slabs.
# ----------------------------------------------------------------------------
def init_params(key, num_inputs, num_actions, hidden):
    ks = jax.random.split(key, 7)
    k_lstm = 1.0 / np.sqrt(hidden)
    w_ih = jax.random.uniform(ks[0], (4 * hidden, num_inputs), jnp.float32, -k_lstm, k_lstm)
    w_hh = jax.random.uniform(ks[1], (4 * hidden, hidden), jnp.float32, -k_lstm, k_lstm)
    b_ih = jax.random.uniform(ks[2], (4 * hidden,), jnp.float32, -k_lstm, k_lstm)
    b_hh = jax.random.uniform(ks[3], (4 * hidden,), jnp.float32, -k_lstm, k_lstm)

    def fanin_init(k, out_f, in_f):                         # rlkit fanin_init
        bound = 1.0 / np.sqrt(in_f)
        return jax.random.uniform(k, (out_f, in_f), jnp.float32, -bound, bound)

    w1 = fanin_init(ks[4], hidden, hidden + num_actions)
    w2 = fanin_init(ks[5], hidden, hidden)
    w3 = fanin_init(ks[6], 1, hidden)
    b1 = jnp.full((hidden,), B_INIT_VALUE, jnp.float32)
    b2 = jnp.full((hidden,), B_INIT_VALUE, jnp.float32)
    b3 = jnp.full((1,), B_INIT_VALUE, jnp.float32)
    return dict(w_ih=w_ih, w_hh=w_hh, b_ih=b_ih, b_hh=b_hh,
                w1=w1, b1=b1, w2=w2, b2=b2, w3=w3, b3=b3)


def prepare_params(p):
    """One-time weight transposes / bias fusion / slab packing (2 operands)."""
    H = p["w_hh"].shape[1]
    I = p["w_ih"].shape[1]
    A = p["w1"].shape[1] - H
    L, HD = _layout(I, H, A)

    def place(slab, row, mat):
        return slab.at[row:row + mat.shape[0], :].set(mat.astype(jnp.float32))

    lstm_slab = jnp.zeros((L["rows"], 4 * H), jnp.float32)
    lstm_slab = place(lstm_slab, L["wih"], p["w_ih"].T)                       # (I, 4H)
    lstm_slab = place(lstm_slab, L["whh"], p["w_hh"].T)                       # (H, 4H)
    lstm_slab = place(lstm_slab, L["bg"],
                      (p["b_ih"] + p["b_hh"]).reshape(1, 4 * H))              # (1, 4H)

    head_slab = jnp.zeros((HD["rows"], H), jnp.float32)
    head_slab = place(head_slab, HD["w1h"], p["w1"][:, :H].T)                 # (H, H)
    head_slab = place(head_slab, HD["w1a"], p["w1"][:, H:].T)                 # (A, H)
    head_slab = place(head_slab, HD["b1"], p["b1"].reshape(1, H))
    head_slab = place(head_slab, HD["w2"], p["w2"].T)                         # (H, H)
    head_slab = place(head_slab, HD["b2"], p["b2"].reshape(1, H))
    head_slab = place(head_slab, HD["w3"], p["w3"].reshape(1, H))
    head_slab = place(head_slab, HD["b3"],
                      jnp.broadcast_to(p["b3"].reshape(1, 1), (1, H)))

    return dict(lstm_slab=lstm_slab, head_slab=head_slab)


# Pure-JAX reference for correctness checking (mirrors the PyTorch module).
def qmodel_reference(state, action, p):
    B, T, _ = state.shape
    H = p["w_hh"].shape[1]
    h = jnp.zeros((B, H), jnp.float32)
    c = jnp.zeros((B, H), jnp.float32)
    for t in range(T):
        gates = state[:, t] @ p["w_ih"].T + h @ p["w_hh"].T + p["b_ih"] + p["b_hh"]
        i = jax.nn.sigmoid(gates[:, :H])
        f = jax.nn.sigmoid(gates[:, H:2 * H])
        g = jnp.tanh(gates[:, 2 * H:3 * H])
        o = jax.nn.sigmoid(gates[:, 3 * H:])
        c = f * c + i * g
        h = o * jnp.tanh(c)
    x = jnp.concatenate([h, action], axis=-1)
    x = jax.nn.relu(x @ p["w1"].T + p["b1"])
    x = jax.nn.relu(x @ p["w2"].T + p["b2"])
    return x @ p["w3"].T + p["b3"]


if __name__ == "__main__":
    B, T, NUM_INPUTS, NUM_ACTIONS, HIDDEN = 2, 8, 4, 4, 32

    key = jax.random.PRNGKey(0)
    k_state, k_action, k_params = jax.random.split(key, 3)
    state = jax.random.normal(k_state, (B, T, NUM_INPUTS), jnp.float32)
    action = jax.random.normal(k_action, (B, NUM_ACTIONS), jnp.float32)
    params = init_params(k_params, NUM_INPUTS, NUM_ACTIONS, HIDDEN)
    kparams = prepare_params(params)      # one-time weight layout / slab prep

    out = qmodel_forward(state, action, kparams)
    out = jax.block_until_ready(out)

    ref = qmodel_reference(state, action, params)
    np.testing.assert_allclose(np.asarray(out), np.asarray(ref), rtol=1e-5, atol=1e-5)

    print("KERNEL_OK")
</pallas_src>

<mosaic_0001>
module attributes {stable_mosaic.version = 11 : i64} {
  func.func @_qmodel_kernel(%arg0: memref<16x4xf32, #tpu.memory_space<vmem>>, %arg1: memref<2x4xf32, #tpu.memory_space<vmem>>, %arg2: memref<48x128xf32, #tpu.memory_space<vmem>>, %arg3: memref<104x32xf32, #tpu.memory_space<vmem>>, %arg4: memref<2x1xf32, #tpu.memory_space<vmem>>) attributes {dimension_semantics = [], scalar_prefetch = 0 : i64, scratch_operands = 0 : i64, tpu.core_type = #tpu.core_type<tc>} {
    %c0 = arith.constant 0 : index
    %c0_0 = arith.constant 0 : index
    %0 = vector.load %arg2[%c0, %c0_0] : memref<48x128xf32, #tpu.memory_space<vmem>>, vector<4x128xf32>
    %c8 = arith.constant 8 : index
    %c0_1 = arith.constant 0 : index
    %1 = vector.load %arg2[%c8, %c0_1] : memref<48x128xf32, #tpu.memory_space<vmem>>, vector<32x128xf32>
    %c40 = arith.constant 40 : index
    %c0_2 = arith.constant 0 : index
    %2 = vector.load %arg2[%c40, %c0_2] : memref<48x128xf32, #tpu.memory_space<vmem>>, vector<1x128xf32>
    %c0_3 = arith.constant 0 : index
    %c0_4 = arith.constant 0 : index
    %3 = vector.load %arg0[%c0_3, %c0_4] : memref<16x4xf32, #tpu.memory_space<vmem>>, vector<16x4xf32>
    %cst = arith.constant dense<0.000000e+00> : vector<16x128xf32>
    %4 = tpu.matmul %3, %0, %cst {dimension_numbers = #tpu.dot_dimension_numbers<[1], [0], [0], [1], [0, 0, 1, 1], [], []>} : vector<16x4xf32>, vector<4x128xf32>, vector<16x128xf32> -> vector<16x128xf32>
    %5 = vector.broadcast %2 : vector<1x128xf32> to vector<16x128xf32>
    %6 = arith.addf %4, %5 : vector<16x128xf32>
    %cst_5 = arith.constant 0.000000e+00 : f32
    %7 = vector.broadcast %cst_5 : f32 to vector<2x32xf32>
    %cst_6 = arith.constant 0.000000e+00 : f32
    %8 = vector.broadcast %cst_6 : f32 to vector<2x32xf32>
    %9 = vector.extract_strided_slice %6 {offsets = [0, 0], sizes = [2, 128], strides = [1, 1]} : vector<16x128xf32> to vector<2x128xf32>
    %cst_7 = arith.constant dense<0.000000e+00> : vector<2x128xf32>
    %10 = tpu.matmul %7, %1, %cst_7 {dimension_numbers = #tpu.dot_dimension_numbers<[1], [0], [0], [1], [0, 0, 1, 1], [], []>} : vector<2x32xf32>, vector<32x128xf32>, vector<2x128xf32> -> vector<2x128xf32>
    %11 = arith.addf %9, %10 : vector<2x128xf32>
    %12 = arith.negf %11 : vector<2x128xf32>
    %13 = math.exp %12 : vector<2x128xf32>
    %cst_8 = arith.constant 1.000000e+00 : f32
    %14 = vector.broadcast %cst_8 : f32 to vector<2x128xf32>
    %15 = arith.addf %14, %13 : vector<2x128xf32>
    %16 = arith.divf %14, %15 : vector<2x128xf32>
    %17 = math.tanh %11 : vector<2x128xf32>
    %18 = vector.extract_strided_slice %16 {offsets = [0, 0], sizes = [2, 32], strides = [1, 1]} : vector<2x128xf32> to vector<2x32xf32>
    %19 = vector.extract_strided_slice %16 {offsets = [0, 32], sizes = [2, 32], strides = [1, 1]} : vector<2x128xf32> to vector<2x32xf32>
    %20 = vector.extract_strided_slice %17 {offsets = [0, 64], sizes = [2, 32], strides = [1, 1]} : vector<2x128xf32> to vector<2x32xf32>
    %21 = vector.extract_strided_slice %16 {offsets = [0, 96], sizes = [2, 32], strides = [1, 1]} : vector<2x128xf32> to vector<2x32xf32>
    %22 = arith.mulf %19, %8 : vector<2x32xf32>
    %23 = arith.mulf %18, %20 : vector<2x32xf32>
    %24 = arith.addf %22, %23 : vector<2x32xf32>
    %25 = math.tanh %24 : vector<2x32xf32>
    %26 = arith.mulf %21, %25 : vector<2x32xf32>
    %27 = vector.extract_strided_slice %6 {offsets = [2, 0], sizes = [2, 128], strides = [1, 1]} : vector<16x128xf32> to vector<2x128xf32>
    %cst_9 = arith.constant dense<0.000000e+00> : vector<2x128xf32>
    %28 = tpu.matmul %26, %1, %cst_9 {dimension_numbers = #tpu.dot_dimension_numbers<[1], [0], [0], [1], [0, 0, 1, 1], [], []>} : vector<2x32xf32>, vector<32x128xf32>, vector<2x128xf32> -> vector<2x128xf32>
    %29 = arith.addf %27, %28 : vector<2x128xf32>
    %30 = arith.negf %29 : vector<2x128xf32>
    %31 = math.exp %30 : vector<2x128xf32>
    %cst_10 = arith.constant 1.000000e+00 : f32
    %32 = vector.broadcast %cst_10 : f32 to vector<2x128xf32>
    %33 = arith.addf %32, %31 : vector<2x128xf32>
    %34 = arith.divf %32, %33 : vector<2x128xf32>
    %35 = math.tanh %29 : vector<2x128xf32>
    %36 = vector.extract_strided_slice %34 {offsets = [0, 0], sizes = [2, 32], strides = [1, 1]} : vector<2x128xf32> to vector<2x32xf32>
    %37 = vector.extract_strided_slice %34 {offsets = [0, 32], sizes = [2, 32], strides = [1, 1]} : vector<2x128xf32> to vector<2x32xf32>
    %38 = vector.extract_strided_slice %35 {offsets = [0, 64], sizes = [2, 32], strides = [1, 1]} : vector<2x128xf32> to vector<2x32xf32>
    %39 = vector.extract_strided_slice %34 {offsets = [0, 96], sizes = [2, 32], strides = [1, 1]} : vector<2x128xf32> to vector<2x32xf32>
    %40 = arith.mulf %37, %24 : vector<2x32xf32>
    %41 = arith.mulf %36, %38 : vector<2x32xf32>
    %42 = arith.addf %40, %41 : vector<2x32xf32>
    %43 = math.tanh %42 : vector<2x32xf32>
    %44 = arith.mulf %39, %43 : vector<2x32xf32>
    %45 = vector.extract_strided_slice %6 {offsets = [4, 0], sizes = [2, 128], strides = [1, 1]} : vector<16x128xf32> to vector<2x128xf32>
    %cst_11 = arith.constant dense<0.000000e+00> : vector<2x128xf32>
    %46 = tpu.matmul %44, %1, %cst_11 {dimension_numbers = #tpu.dot_dimension_numbers<[1], [0], [0], [1], [0, 0, 1, 1], [], []>} : vector<2x32xf32>, vector<32x128xf32>, vector<2x128xf32> -> vector<2x128xf32>
    %47 = arith.addf %45, %46 : vector<2x128xf32>
    %48 = arith.negf %47 : vector<2x128xf32>
    %49 = math.exp %48 : vector<2x128xf32>
    %cst_12 = arith.constant 1.000000e+00 : f32
    %50 = vector.broadcast %cst_12 : f32 to vector<2x128xf32>
    %51 = arith.addf %50, %49 : vector<2x128xf32>
    %52 = arith.divf %50, %51 : vector<2x128xf32>
    %53 = math.tanh %47 : vector<2x128xf32>
    %54 = vector.extract_strided_slice %52 {offsets = [0, 0], sizes = [2, 32], strides = [1, 1]} : vector<2x128xf32> to vector<2x32xf32>
    %55 = vector.extract_strided_slice %52 {offsets = [0, 32], sizes = [2, 32], strides = [1, 1]} : vector<2x128xf32> to vector<2x32xf32>
    %56 = vector.extract_strided_slice %53 {offsets = [0, 64], sizes = [2, 32], strides = [1, 1]} : vector<2x128xf32> to vector<2x32xf32>
    %57 = vector.extract_strided_slice %52 {offsets = [0, 96], sizes = [2, 32], strides = [1, 1]} : vector<2x128xf32> to vector<2x32xf32>
    %58 = arith.mulf %55, %42 : vector<2x32xf32>
    %59 = arith.mulf %54, %56 : vector<2x32xf32>
    %60 = arith.addf %58, %59 : vector<2x32xf32>
    %61 = math.tanh %60 : vector<2x32xf32>
    %62 = arith.mulf %57, %61 : vector<2x32xf32>
    %63 = vector.extract_strided_slice %6 {offsets = [6, 0], sizes = [2, 128], strides = [1, 1]} : vector<16x128xf32> to vector<2x128xf32>
    %cst_13 = arith.constant dense<0.000000e+00> : vector<2x128xf32>
    %64 = tpu.matmul %62, %1, %cst_13 {dimension_numbers = #tpu.dot_dimension_numbers<[1], [0], [0], [1], [0, 0, 1, 1], [], []>} : vector<2x32xf32>, vector<32x128xf32>, vector<2x128xf32> -> vector<2x128xf32>
    %65 = arith.addf %63, %64 : vector<2x128xf32>
    %66 = arith.negf %65 : vector<2x128xf32>
    %67 = math.exp %66 : vector<2x128xf32>
    %cst_14 = arith.constant 1.000000e+00 : f32
    %68 = vector.broadcast %cst_14 : f32 to vector<2x128xf32>
    %69 = arith.addf %68, %67 : vector<2x128xf32>
    %70 = arith.divf %68, %69 : vector<2x128xf32>
    %71 = math.tanh %65 : vector<2x128xf32>
    %72 = vector.extract_strided_slice %70 {offsets = [0, 0], sizes = [2, 32], strides = [1, 1]} : vector<2x128xf32> to vector<2x32xf32>
    %73 = vector.extract_strided_slice %70 {offsets = [0, 32], sizes = [2, 32], strides = [1, 1]} : vector<2x128xf32> to vector<2x32xf32>
    %74 = vector.extract_strided_slice %71 {offsets = [0, 64], sizes = [2, 32], strides = [1, 1]} : vector<2x128xf32> to vector<2x32xf32>
    %75 = vector.extract_strided_slice %70 {offsets = [0, 96], sizes = [2, 32], strides = [1, 1]} : vector<2x128xf32> to vector<2x32xf32>
    %76 = arith.mulf %73, %60 : vector<2x32xf32>
    %77 = arith.mulf %72, %74 : vector<2x32xf32>
    %78 = arith.addf %76, %77 : vector<2x32xf32>
    %79 = math.tanh %78 : vector<2x32xf32>
    %80 = arith.mulf %75, %79 : vector<2x32xf32>
    %81 = vector.extract_strided_slice %6 {offsets = [8, 0], sizes = [2, 128], strides = [1, 1]} : vector<16x128xf32> to vector<2x128xf32>
    %cst_15 = arith.constant dense<0.000000e+00> : vector<2x128xf32>
    %82 = tpu.matmul %80, %1, %cst_15 {dimension_numbers = #tpu.dot_dimension_numbers<[1], [0], [0], [1], [0, 0, 1, 1], [], []>} : vector<2x32xf32>, vector<32x128xf32>, vector<2x128xf32> -> vector<2x128xf32>
    %83 = arith.addf %81, %82 : vector<2x128xf32>
    %84 = arith.negf %83 : vector<2x128xf32>
    %85 = math.exp %84 : vector<2x128xf32>
    %cst_16 = arith.constant 1.000000e+00 : f32
    %86 = vector.broadcast %cst_16 : f32 to vector<2x128xf32>
    %87 = arith.addf %86, %85 : vector<2x128xf32>
    %88 = arith.divf %86, %87 : vector<2x128xf32>
    %89 = math.tanh %83 : vector<2x128xf32>
    %90 = vector.extract_strided_slice %88 {offsets = [0, 0], sizes = [2, 32], strides = [1, 1]} : vector<2x128xf32> to vector<2x32xf32>
    %91 = vector.extract_strided_slice %88 {offsets = [0, 32], sizes = [2, 32], strides = [1, 1]} : vector<2x128xf32> to vector<2x32xf32>
    %92 = vector.extract_strided_slice %89 {offsets = [0, 64], sizes = [2, 32], strides = [1, 1]} : vector<2x128xf32> to vector<2x32xf32>
    %93 = vector.extract_strided_slice %88 {offsets = [0, 96], sizes = [2, 32], strides = [1, 1]} : vector<2x128xf32> to vector<2x32xf32>
    %94 = arith.mulf %91, %78 : vector<2x32xf32>
    %95 = arith.mulf %90, %92 : vector<2x32xf32>
    %96 = arith.addf %94, %95 : vector<2x32xf32>
    %97 = math.tanh %96 : vector<2x32xf32>
    %98 = arith.mulf %93, %97 : vector<2x32xf32>
    %99 = vector.extract_strided_slice %6 {offsets = [10, 0], sizes = [2, 128], strides = [1, 1]} : vector<16x128xf32> to vector<2x128xf32>
    %cst_17 = arith.constant dense<0.000000e+00> : vector<2x128xf32>
    %100 = tpu.matmul %98, %1, %cst_17 {dimension_numbers = #tpu.dot_dimension_numbers<[1], [0], [0], [1], [0, 0, 1, 1], [], []>} : vector<2x32xf32>, vector<32x128xf32>, vector<2x128xf32> -> vector<2x128xf32>
    %101 = arith.addf %99, %100 : vector<2x128xf32>
    %102 = arith.negf %101 : vector<2x128xf32>
    %103 = math.exp %102 : vector<2x128xf32>
    %cst_18 = arith.constant 1.000000e+00 : f32
    %104 = vector.broadcast %cst_18 : f32 to vector<2x128xf32>
    %105 = arith.addf %104, %103 : vector<2x128xf32>
    %106 = arith.divf %104, %105 : vector<2x128xf32>
    %107 = math.tanh %101 : vector<2x128xf32>
    %108 = vector.extract_strided_slice %106 {offsets = [0, 0], sizes = [2, 32], strides = [1, 1]} : vector<2x128xf32> to vector<2x32xf32>
    %109 = vector.extract_strided_slice %106 {offsets = [0, 32], sizes = [2, 32], strides = [1, 1]} : vector<2x128xf32> to vector<2x32xf32>
    %110 = vector.extract_strided_slice %107 {offsets = [0, 64], sizes = [2, 32], strides = [1, 1]} : vector<2x128xf32> to vector<2x32xf32>
    %111 = vector.extract_strided_slice %106 {offsets = [0, 96], sizes = [2, 32], strides = [1, 1]} : vector<2x128xf32> to vector<2x32xf32>
    %112 = arith.mulf %109, %96 : vector<2x32xf32>
    %113 = arith.mulf %108, %110 : vector<2x32xf32>
    %114 = arith.addf %112, %113 : vector<2x32xf32>
    %115 = math.tanh %114 : vector<2x32xf32>
    %116 = arith.mulf %111, %115 : vector<2x32xf32>
    %117 = vector.extract_strided_slice %6 {offsets = [12, 0], sizes = [2, 128], strides = [1, 1]} : vector<16x128xf32> to vector<2x128xf32>
    %cst_19 = arith.constant dense<0.000000e+00> : vector<2x128xf32>
    %118 = tpu.matmul %116, %1, %cst_19 {dimension_numbers = #tpu.dot_dimension_numbers<[1], [0], [0], [1], [0, 0, 1, 1], [], []>} : vector<2x32xf32>, vector<32x128xf32>, vector<2x128xf32> -> vector<2x128xf32>
    %119 = arith.addf %117, %118 : vector<2x128xf32>
    %120 = arith.negf %119 : vector<2x128xf32>
    %121 = math.exp %120 : vector<2x128xf32>
    %cst_20 = arith.constant 1.000000e+00 : f32
    %122 = vector.broadcast %cst_20 : f32 to vector<2x128xf32>
    %123 = arith.addf %122, %121 : vector<2x128xf32>
    %124 = arith.divf %122, %123 : vector<2x128xf32>
    %125 = math.tanh %119 : vector<2x128xf32>
    %126 = vector.extract_strided_slice %124 {offsets = [0, 0], sizes = [2, 32], strides = [1, 1]} : vector<2x128xf32> to vector<2x32xf32>
    %127 = vector.extract_strided_slice %124 {offsets = [0, 32], sizes = [2, 32], strides = [1, 1]} : vector<2x128xf32> to vector<2x32xf32>
    %128 = vector.extract_strided_slice %125 {offsets = [0, 64], sizes = [2, 32], strides = [1, 1]} : vector<2x128xf32> to vector<2x32xf32>
    %129 = vector.extract_strided_slice %124 {offsets = [0, 96], sizes = [2, 32], strides = [1, 1]} : vector<2x128xf32> to vector<2x32xf32>
    %130 = arith.mulf %127, %114 : vector<2x32xf32>
    %131 = arith.mulf %126, %128 : vector<2x32xf32>
    %132 = arith.addf %130, %131 : vector<2x32xf32>
    %133 = math.tanh %132 : vector<2x32xf32>
    %134 = arith.mulf %129, %133 : vector<2x32xf32>
    %135 = vector.extract_strided_slice %6 {offsets = [14, 0], sizes = [2, 128], strides = [1, 1]} : vector<16x128xf32> to vector<2x128xf32>
    %cst_21 = arith.constant dense<0.000000e+00> : vector<2x128xf32>
    %136 = tpu.matmul %134, %1, %cst_21 {dimension_numbers = #tpu.dot_dimension_numbers<[1], [0], [0], [1], [0, 0, 1, 1], [], []>} : vector<2x32xf32>, vector<32x128xf32>, vector<2x128xf32> -> vector<2x128xf32>
    %137 = arith.addf %135, %136 : vector<2x128xf32>
    %138 = arith.negf %137 : vector<2x128xf32>
    %139 = math.exp %138 : vector<2x128xf32>
    %cst_22 = arith.constant 1.000000e+00 : f32
    %140 = vector.broadcast %cst_22 : f32 to vector<2x128xf32>
    %141 = arith.addf %140, %139 : vector<2x128xf32>
    %142 = arith.divf %140, %141 : vector<2x128xf32>
    %143 = math.tanh %137 : vector<2x128xf32>
    %144 = vector.extract_strided_slice %142 {offsets = [0, 0], sizes = [2, 32], strides = [1, 1]} : vector<2x128xf32> to vector<2x32xf32>
    %145 = vector.extract_strided_slice %142 {offsets = [0, 32], sizes = [2, 32], strides = [1, 1]} : vector<2x128xf32> to vector<2x32xf32>
    %146 = vector.extract_strided_slice %143 {offsets = [0, 64], sizes = [2, 32], strides = [1, 1]} : vector<2x128xf32> to vector<2x32xf32>
    %147 = vector.extract_strided_slice %142 {offsets = [0, 96], sizes = [2, 32], strides = [1, 1]} : vector<2x128xf32> to vector<2x32xf32>
    %148 = arith.mulf %145, %132 : vector<2x32xf32>
    %149 = arith.mulf %144, %146 : vector<2x32xf32>
    %150 = arith.addf %148, %149 : vector<2x32xf32>
    %151 = math.tanh %150 : vector<2x32xf32>
    %152 = arith.mulf %147, %151 : vector<2x32xf32>
    %c0_23 = arith.constant 0 : index
    %c0_24 = arith.constant 0 : index
    %153 = vector.load %arg3[%c0_23, %c0_24] : memref<104x32xf32, #tpu.memory_space<vmem>>, vector<32x32xf32>
    %c32 = arith.constant 32 : index
    %c0_25 = arith.constant 0 : index
    %154 = vector.load %arg3[%c32, %c0_25] : memref<104x32xf32, #tpu.memory_space<vmem>>, vector<4x32xf32>
    %c40_26 = arith.constant 40 : index
    %c0_27 = arith.constant 0 : index
    %155 = vector.load %arg3[%c40_26, %c0_27] : memref<104x32xf32, #tpu.memory_space<vmem>>, vector<1x32xf32>
    %c48 = arith.constant 48 : index
    %c0_28 = arith.constant 0 : index
    %156 = vector.load %arg3[%c48, %c0_28] : memref<104x32xf32, #tpu.memory_space<vmem>>, vector<32x32xf32>
    %c80 = arith.constant 80 : index
    %c0_29 = arith.constant 0 : index
    %157 = vector.load %arg3[%c80, %c0_29] : memref<104x32xf32, #tpu.memory_space<vmem>>, vector<1x32xf32>
    %c88 = arith.constant 88 : index
    %c0_30 = arith.constant 0 : index
    %158 = vector.load %arg3[%c88, %c0_30] : memref<104x32xf32, #tpu.memory_space<vmem>>, vector<1x32xf32>
    %c96 = arith.constant 96 : index
    %c0_31 = arith.constant 0 : index
    %159 = vector.load %arg3[%c96, %c0_31] : memref<104x32xf32, #tpu.memory_space<vmem>>, vector<1x32xf32>
    %160 = vector.extract_strided_slice %159 {offsets = [0, 0], sizes = [1, 1], strides = [1, 1]} : vector<1x32xf32> to vector<1x1xf32>
    %cst_32 = arith.constant dense<0.000000e+00> : vector<2x32xf32>
    %161 = tpu.matmul %152, %153, %cst_32 {dimension_numbers = #tpu.dot_dimension_numbers<[1], [0], [0], [1], [0, 0, 1, 1], [], []>} : vector<2x32xf32>, vector<32x32xf32>, vector<2x32xf32> -> vector<2x32xf32>
    %c0_33 = arith.constant 0 : index
    %c0_34 = arith.constant 0 : index
    %162 = vector.load %arg1[%c0_33, %c0_34] : memref<2x4xf32, #tpu.memory_space<vmem>>, vector<2x4xf32>
    %cst_35 = arith.constant dense<0.000000e+00> : vector<2x32xf32>
    %163 = tpu.matmul %162, %154, %cst_35 {dimension_numbers = #tpu.dot_dimension_numbers<[1], [0], [0], [1], [0, 0, 1, 1], [], []>} : vector<2x4xf32>, vector<4x32xf32>, vector<2x32xf32> -> vector<2x32xf32>
    %164 = arith.addf %161, %163 : vector<2x32xf32>
    %165 = vector.broadcast %155 : vector<1x32xf32> to vector<2x32xf32>
    %166 = arith.addf %164, %165 : vector<2x32xf32>
    %cst_36 = arith.constant 0.000000e+00 : f32
    %167 = vector.broadcast %cst_36 : f32 to vector<2x32xf32>
    %168 = arith.maximumf %166, %167 : vector<2x32xf32>
    %cst_37 = arith.constant dense<0.000000e+00> : vector<2x32xf32>
    %169 = tpu.matmul %168, %156, %cst_37 {dimension_numbers = #tpu.dot_dimension_numbers<[1], [0], [0], [1], [0, 0, 1, 1], [], []>} : vector<2x32xf32>, vector<32x32xf32>, vector<2x32xf32> -> vector<2x32xf32>
    %170 = vector.broadcast %157 : vector<1x32xf32> to vector<2x32xf32>
    %171 = arith.addf %169, %170 : vector<2x32xf32>
    %cst_38 = arith.constant 0.000000e+00 : f32
    %172 = vector.broadcast %cst_38 : f32 to vector<2x32xf32>
    %173 = arith.maximumf %171, %172 : vector<2x32xf32>
    %174 = vector.broadcast %158 : vector<1x32xf32> to vector<2x32xf32>
    %175 = arith.mulf %173, %174 : vector<2x32xf32>
    %cst_39 = arith.constant dense<0.000000e+00> : vector<2xf32>
    %176 = vector.multi_reduction <add>, %175, %cst_39 [1] : vector<2x32xf32> to vector<2xf32>
    %177 = vector.shape_cast %176 : vector<2xf32> to vector<2x1xf32>
    %178 = vector.broadcast %160 : vector<1x1xf32> to vector<2x1xf32>
    %179 = arith.addf %177, %178 : vector<2x1xf32>
    %c0_40 = arith.constant 0 : index
    %c0_41 = arith.constant 0 : index
    %180 = vector.load %arg4[%c0_40, %c0_41] : memref<2x1xf32, #tpu.memory_space<vmem>>, vector<2x1xf32>
    tpu.vector_store %arg4[%c0_40, %c0_41], %179 {strides = array<i32>} : memref<2x1xf32, #tpu.memory_space<vmem>>, vector<2x1xf32>,
    return
  }
}

</mosaic_0001>

<bundles_post_ra>
// kernel: tpu_custom_call.1
= control target key start
LH: loop header
LB: loop body
LE: loop exit
PB: predicated region body
PF: predicated region fallthrough
CT: control target
= control target key end

     0   :  { %vm36_vm0 = vcmask 1043456   ;;  %vm29_vm1 = vcmask 31744   ;;  %v1559_v0 = vmov 0.0|0.0   ;;  %vm1560_vm2 = vmmov 0   ;;  %s1562_s30 = smov 64   ;;  %s1781_s2 = inlined_call_operand.vmem [shape: f32[48,128], index: 2, kind: input, shape index: {}]   ;;  %s1782_s0 = inlined_call_operand.vmem [shape: f32[16,4], index: 0, kind: input, shape index: {}]   ;;  %s1783_s3 = inlined_call_operand.vmem [shape: f32[104,32], index: 3, kind: input, shape index: {}]   ;;  %s1784_s1 = inlined_call_operand.vmem [shape: f32[2,4], index: 1, kind: input, shape index: {}]   ;;  %s1785_s4 = inlined_call_operand.vmem [shape: f32[2,1], index: 4, kind: output, shape index: {}]  }
   0x1   :  { %1430 = vmatprep.subr.bf16.mxu1 %v1559_v0  ;;  %v18_v1 = vld [vmem:[%s1781_s2 + $0x8] sm:$0xff]  ;;  %v19_v2 = vld [vmem:[%s1781_s2 + $0x10] sm:$0xff]  ;;  %v17_v3 = vld [vmem:[%s1781_s2] sm:$0xf]  ;;  %v1561_v8 = vmov 0.0   ;;  %vm115_vm3 = vcmask 261120  }
   0x2   :  { %v1599_v4 = vpack.c.bf16 %v19_v2, %v18_v1  ;;  %1310 = vmatprep.subr.msk.mxu0 %vm36_vm0, %v17_v3  ;;  %v23_v5 = vld [vmem:[%s1782_s0] sm:$0xff]  ;;  %v24_v6 = vld [vmem:[%s1782_s0 + $0x8] sm:$0xff]  ;;  %v20_v7 = vld [vmem:[%s1781_s2 + $0x18] sm:$0xff]  ;;  %1323 = vmatprep.mubr.msk.f32.mxu1 %vm1560_vm2, %v1561_v8  ;;  %vm1213_vm4 = vcmask 254976   ;;  %vm1222_vm5 = vcmask 1024  }
   0x3   :  { %1311 = vmatpush3.msk.msra.mxu0 %vm36_vm0, %v17_v3  ;;  %1312 = vmatprep.mubr.msk.f32.mxu0 %vm29_vm1, %v23_v5  ;;  %v21_v9 = vld [vmem:[%s1781_s2 + $0x20] sm:$0xff]  ;;  %v1228_v11 = vld [vmem:[%s1781_s2 + $0x28] ss:$0 sm:$0xff]  ;;  %s1563_s2 = smov 32  }
   0x4   :  { %1432 = vmatpush3.bf16.msra.mxu1 %v1599_v4  ;;  %1313 = vmatmul.mubr.msk.f32.vlgmr.msra.gmra.mrb[0].mxu0 %vm29_vm1, %v24_v6  ;;  %v1620_v10 = vpack.c.bf16 %v21_v9, %v20_v7 }
   0x5   :  { %1433 = vmatprep.subr.bf16.mxu1 %v1559_v0  ;;  %1436 = vmatprep.subr.bf16.mxu0 %v1559_v0 }
   0x6   :  { %1438 = vmatpush3.bf16.msra.mxu0 %v1599_v4  ;;  %1334 = vmatprep.mubr.msk.f32.mxu0 %vm1560_vm2, %v1561_v8 }
   0x7   :  { %1439 = vmatprep.subr.bf16.mxu0 %v1559_v0 }
   0x8   :  { %1435 = vmatpush3.bf16.msra.mxu1 %v1620_v10 }
   0x9   :  { %1442 = vmatprep.subr.bf16.mxu1 %v1559_v0 }
   0xa   :  { %1441 = vmatpush3.bf16.msra.mxu0 %v1620_v10 }
   0xb   :  { %1324 = vmatmul.mubr.f32.vlgmr.msra.gmra.mrb[0].mxu1 %v1561_v8  ;;  %1448 = vmatprep.subr.bf16.mxu0 %v1559_v0 }
   0xc   :  { %1444 = vmatpush3.bf16.msra.mxu1 %v1599_v4  ;;  %1345 = vmatprep.mubr.msk.f32.mxu1 %vm1560_vm2, %v1561_v8 }
   0xd   :  { %1445 = vmatprep.subr.bf16.mxu1 %v1559_v0 }
  0x10   :  { %1447 = vmatpush3.bf16.msra.mxu1 %v1620_v10 }
  0x11   :  { %1454 = vmatprep.subr.bf16.mxu1 %v1559_v0 }
  0xd7   :  { %v1314_v12 = vpop.f32.mrb[0].mxu0 }
  0xd8   :  { %v1642_v13 = vadd.f32 %v1314_v12, %v1228_v11  ;;  %v106_v14 = vpop.f32.mrb[1].mxu0 }
  0xd9   :  { %v1644_v15 = vadd.f32 %v1228_v11, %v106_v14 }
  0xde   :  { %v185_v16 = vpop.f32.mrb[0].mxu1 }
  0xdf   :  { %v189_v17 = vadd.f32 %v185_v16, %v1644_v15  ;;  %v1325_v18 = vpop.f32.mrb[1].mxu1 }
  0xe1   :  { %1495 = vtanh.f32 %v189_v17  ;;  %v1232_v20 = vmul.f32 -1.442695, %v189_v17 }
  0xe3   :  { %1497 = vpow2.f32 %v1232_v20 }
  0xeb   :  { %v1496_v19 = vpop.eup %1495 }
  0xec   :  { %199 = vrot.lane.b32.xlu0 %v1496_v19, %s1562_s30 }
  0xed   :  { %v1498_v21 = vpop.eup %1497 }
  0xee   :  { %v193_v22 = vadd.f32 1.0, %v1498_v21 }
  0xf0   :  { %1499 = vrcp.f32 %v193_v22 }
  0xfa   :  { %v1500_v23 = vpop.eup %1499 }
  0xfb   :  { %v197_v26 = vmul.f32 0.0, %v1500_v23 }
 0x15e   :  { %v200_v24 = vpop.permute.xlu0 %199 }
 0x15f   :  { %v202_v25 = vmul.f32 %v1500_v23, %v200_v24 }
 0x161   :  { %204 = vrot.lane.b32.xlu0 %v202_v25, %s1563_s2 }
 0x1d3   :  { %v205_v27 = vpop.permute.xlu0 %204 }
 0x1d4   :  { %v207_v28 = vadd.f32 %v205_v27, %v197_v26 }
 0x1d6   :  { %1501 = vtanh.f32 %v207_v28  ;;  %v301_v44 = vrot.slane %v207_v28, 6 }
 0x1e0   :  { %v1502_v29 = vpop.eup %1501 }
 0x1e1   :  { %210 = vrot.lane.b32.xlu1 %v1502_v29, %s1562_s30 }
 0x253   :  { %v211_v30 = vpop.permute.xlu1 %210 }
 0x254   :  { %v213_v31 = vmul.f32 %v1500_v23, %v211_v30 }
 0x256   :  { %215 = vrot.lane.b32.xlu1 %v213_v31, %s1563_s2 }
 0x2c8   :  { %v216_v32 = vpop.permute.xlu1 %215 }
 0x2c9   :  { %1335 = vmatmul.mubr.msk.f32.vlgmr.msra.gmra.mrb[2].mxu0 %vm115_vm3, %v216_v32 }
 0x2ca   :  { %1450 = vmatpush3.bf16.msra.mxu0 %v1599_v4  ;;  %1356 = vmatprep.mubr.msk.f32.mxu0 %vm1560_vm2, %v1561_v8 }
 0x2cb   :  { %1451 = vmatprep.subr.bf16.mxu0 %v1559_v0 }
 0x2ce   :  { %1453 = vmatpush3.bf16.msra.mxu0 %v1620_v10 }
 0x2cf   :  { %1460 = vmatprep.subr.bf16.mxu0 %v1559_v0 }
 0x39c   :  { %v285_v33 = vpop.f32.mrb[2].mxu0 }
 0x39d   :  { %v290_v34 = vrot.slane %v285_v33, 6  ;;  %v1336_v35 = vpop.f32.mrb[3].mxu0 }
 0x39f   :  { %v292_v36 = vadd.f32 %v290_v34, %v1644_v15 }
 0x3a1   :  { %1503 = vtanh.f32 %v292_v36  ;;  %v1234_v38 = vmul.f32 -1.442695, %v292_v36 }
 0x3a3   :  { %1505 = vpow2.f32 %v1234_v38 }
 0x3ab   :  { %v1504_v37 = vpop.eup %1503 }
 0x3ac   :  { %305 = vrot.lane.b32.xlu0 %v1504_v37, %s1562_s30 }
 0x3ad   :  { %v1506_v39 = vpop.eup %1505 }
 0x3ae   :  { %v296_v40 = vadd.f32 1.0, %v1506_v39 }
 0x3b0   :  { %1507 = vrcp.f32 %v296_v40 }
 0x3ba   :  { %v1508_v41 = vpop.eup %1507 }
 0x3bb   :  { %v303_v45 = vmul.f32 %v1508_v41, %v301_v44 }
 0x41e   :  { %v306_v42 = vpop.permute.xlu0 %305 }
 0x41f   :  { %v308_v43 = vmul.f32 %v1508_v41, %v306_v42 }
 0x421   :  { %310 = vrot.lane.b32.xlu1 %v308_v43, %s1563_s2 }
 0x493   :  { %v311_v46 = vpop.permute.xlu1 %310 }
 0x494   :  { %v313_v47 = vadd.f32 %v311_v46, %v303_v45 }
 0x496   :  { %1509 = vtanh.f32 %v313_v47  ;;  %v408_v1 = vrot.slane %v313_v47, 6 }
 0x4a0   :  { %v1510_v48 = vpop.eup %1509 }
 0x4a1   :  { %316 = vrot.lane.b32.xlu0 %v1510_v48, %s1562_s30 }
 0x513   :  { %v317_v49 = vpop.permute.xlu0 %316 }
 0x514   :  { %v319_v50 = vmul.f32 %v1508_v41, %v317_v49 }
 0x516   :  { %v321_v51 = vrot.slane %v319_v50, 2 }
 0x518   :  { %322 = vrot.lane.b32.xlu1 %v321_v51, %s1563_s2 }
 0x58a   :  { %v323_v52 = vpop.permute.xlu1 %322 }
 0x58b   :  { %1346 = vmatmul.mubr.msk.f32.vlgmr.msra.gmra.mrb[2].mxu1 %vm115_vm3, %v323_v52 }
 0x58c   :  { %1456 = vmatpush3.bf16.msra.mxu1 %v1599_v4  ;;  %1367 = vmatprep.mubr.msk.f32.mxu1 %vm1560_vm2, %v1561_v8 }
 0x58d   :  { %1457 = vmatprep.subr.bf16.mxu1 %v1559_v0 }
 0x590   :  { %1459 = vmatpush3.bf16.msra.mxu1 %v1620_v10 }
 0x591   :  { %1466 = vmatprep.subr.bf16.mxu1 %v1559_v0 }
 0x65e   :  { %v392_v53 = vpop.f32.mrb[2].mxu1 }
 0x65f   :  { %v397_v54 = vrot.slane %v392_v53, 4  ;;  %v1347_v55 = vpop.f32.mrb[3].mxu1 }
 0x661   :  { %v399_v56 = vadd.f32 %v397_v54, %v1644_v15 }
 0x663   :  { %1511 = vtanh.f32 %v399_v56  ;;  %v1236_v58 = vmul.f32 -1.442695, %v399_v56 }
 0x665   :  { %1513 = vpow2.f32 %v1236_v58 }
 0x66d   :  { %v1512_v57 = vpop.eup %1511 }
 0x66e   :  { %412 = vrot.lane.b32.xlu0 %v1512_v57, %s1562_s30 }
 0x66f   :  { %v1514_v59 = vpop.eup %1513 }
 0x670   :  { %v403_v60 = vadd.f32 1.0, %v1514_v59 }
 0x672   :  { %1515 = vrcp.f32 %v403_v60 }
 0x67c   :  { %v1516_v61 = vpop.eup %1515 }
 0x67d   :  { %v410_v2 = vmul.f32 %v1516_v61, %v408_v1 }
 0x6e0   :  { %v413_v62 = vpop.permute.xlu0 %412 }
 0x6e1   :  { %v415_v63 = vmul.f32 %v1516_v61, %v413_v62 }
 0x6e3   :  { %417 = vrot.lane.b32.xlu1 %v415_v63, %s1563_s2 }
 0x755   :  { %v418_v3 = vpop.permute.xlu1 %417 }
 0x756   :  { %v420_v5 = vadd.f32 %v418_v3, %v410_v2 }
 0x758   :  { %1517 = vtanh.f32 %v420_v5  ;;  %v515_v26 = vrot.slane %v420_v5, 6 }
 0x762   :  { %v1518_v6 = vpop.eup %1517 }
 0x763   :  { %423 = vrot.lane.b32.xlu0 %v1518_v6, %s1562_s30 }
 0x7d5   :  { %v424_v7 = vpop.permute.xlu0 %423 }
 0x7d6   :  { %v426_v9 = vmul.f32 %v1516_v61, %v424_v7 }
 0x7d8   :  { %v428_v11 = vrot.slane %v426_v9, 4 }
 0x7da   :  { %429 = vrot.lane.b32.xlu1 %v428_v11, %s1563_s2 }
 0x84c   :  { %v430_v12 = vpop.permute.xlu1 %429 }
 0x84d   :  { %1357 = vmatmul.mubr.msk.f32.vlgmr.msra.gmra.mrb[4].mxu0 %vm115_vm3, %v430_v12 }
 0x84e   :  { %1462 = vmatpush3.bf16.msra.mxu0 %v1599_v4  ;;  %1378 = vmatprep.mubr.msk.f32.mxu0 %vm1560_vm2, %v1561_v8 }
 0x84f   :  { %1463 = vmatprep.subr.bf16.mxu0 %v1559_v0 }
 0x852   :  { %1465 = vmatpush3.bf16.msra.mxu0 %v1620_v10 }
 0x853   :  { %1472 = vmatprep.subr.bf16.mxu0 %v1559_v0 }
 0x920   :  { %v499_v14 = vpop.f32.mrb[4].mxu0 }
 0x921   :  { %v504_v16 = vrot.slane %v499_v14, 2  ;;  %v1358_v17 = vpop.f32.mrb[5].mxu0 }
 0x923   :  { %v506_v18 = vadd.f32 %v504_v16, %v1644_v15 }
 0x925   :  { %1519 = vtanh.f32 %v506_v18  ;;  %v1238_v20 = vmul.f32 -1.442695, %v506_v18 }
 0x927   :  { %1521 = vpow2.f32 %v1238_v20 }
 0x92f   :  { %v1520_v19 = vpop.eup %1519 }
 0x930   :  { %519 = vrot.lane.b32.xlu0 %v1520_v19, %s1562_s30 }
 0x931   :  { %v1522_v21 = vpop.eup %1521 }
 0x932   :  { %v510_v22 = vadd.f32 1.0, %v1522_v21 }
 0x934   :  { %1523 = vrcp.f32 %v510_v22 }
 0x93e   :  { %v1524_v23 = vpop.eup %1523 }
 0x93f   :  { %v517_v27 = vmul.f32 %v1524_v23, %v515_v26 }
 0x9a2   :  { %v520_v24 = vpop.permute.xlu0 %519 }
 0x9a3   :  { %v522_v25 = vmul.f32 %v1524_v23, %v520_v24 }
 0x9a5   :  { %524 = vrot.lane.b32.xlu1 %v522_v25, %s1563_s2 }
 0xa17   :  { %v525_v28 = vpop.permute.xlu1 %524 }
 0xa18   :  { %v527_v29 = vadd.f32 %v525_v28, %v517_v27 }
 0xa1a   :  { %1525 = vtanh.f32 %v527_v29  ;;  %v619_v44 = vrot.slane %v527_v29, 6 }
 0xa24   :  { %v1526_v15 = vpop.eup %1525 }
 0xa25   :  { %530 = vrot.lane.b32.xlu0 %v1526_v15, %s1562_s30 }
 0xa97   :  { %v531_v30 = vpop.permute.xlu0 %530 }
 0xa98   :  { %v533_v31 = vmul.f32 %v1524_v23, %v531_v30 }
 0xa9a   :  { %v535_v32 = vrot.slane %v533_v31, 6 }
 0xa9c   :  { %536 = vrot.lane.b32.xlu1 %v535_v32, %s1563_s2 }
 0xb0e   :  { %v537_v33 = vpop.permute.xlu1 %536 }
 0xb0f   :  { %1368 = vmatmul.mubr.msk.f32.vlgmr.msra.gmra.mrb[4].mxu1 %vm115_vm3, %v537_v33 }
 0xb10   :  { %1468 = vmatpush3.bf16.msra.mxu1 %v1599_v4  ;;  %1389 = vmatprep.mubr.msk.f32.mxu1 %vm1560_vm2, %v1561_v8 }
 0xb11   :  { %1469 = vmatprep.subr.bf16.mxu1 %v1559_v0 }
 0xb14   :  { %1471 = vmatpush3.bf16.msra.mxu1 %v1620_v10 }
 0xb15   :  { %1403 = vmatprep.subr.mxu1 %v1561_v8 }
 0xbe2   :  { %v606_v34 = vpop.f32.mrb[4].mxu1 }
 0xbe3   :  { %v610_v35 = vadd.f32 %v606_v34, %v1642_v13  ;;  %v1369_v36 = vpop.f32.mrb[5].mxu1 }
 0xbe5   :  { %1527 = vtanh.f32 %v610_v35  ;;  %v1240_v38 = vmul.f32 -1.442695, %v610_v35 }
 0xbe7   :  { %1529 = vpow2.f32 %v1240_v38 }
 0xbef   :  { %v1528_v37 = vpop.eup %1527 }
 0xbf0   :  { %623 = vrot.lane.b32.xlu0 %v1528_v37, %s1562_s30 }
 0xbf1   :  { %v1530_v39 = vpop.eup %1529 }
 0xbf2   :  { %v614_v40 = vadd.f32 1.0, %v1530_v39 }
 0xbf4   :  { %1531 = vrcp.f32 %v614_v40 }
 0xbfe   :  { %v1532_v41 = vpop.eup %1531 }
 0xbff   :  { %v621_v45 = vmul.f32 %v1532_v41, %v619_v44 }
 0xc62   :  { %v624_v42 = vpop.permute.xlu0 %623 }
 0xc63   :  { %v626_v43 = vmul.f32 %v1532_v41, %v624_v42 }
 0xc65   :  { %628 = vrot.lane.b32.xlu1 %v626_v43, %s1563_s2 }
 0xcd7   :  { %v629_v46 = vpop.permute.xlu1 %628 }
 0xcd8   :  { %v631_v47 = vadd.f32 %v629_v46, %v621_v45  ;;  %v959_v46 = vld [vmem:[%s1783_s3 + $0x8] sm:$0xff] }
 0xcda   :  { %1533 = vtanh.f32 %v631_v47 }
 0xce4   :  { %v1534_v48 = vpop.eup %1533 }
 0xce5   :  { %634 = vrot.lane.b32.xlu0 %v1534_v48, %s1562_s30 }
 0xd57   :  { %v635_v49 = vpop.permute.xlu0 %634 }
 0xd58   :  { %v637_v50 = vmul.f32 %v1532_v41, %v635_v49  ;;  %v960_v49 = vld [vmem:[%s1783_s3 + $0x10] sm:$0xff] }
 0xd5a   :  { %639 = vrot.lane.b32.xlu1 %v637_v50, %s1563_s2  ;;  %v961_v50 = vld [vmem:[%s1783_s3 + $0x18] sm:$0xff] }
 0xdcc   :  { %v640_v51 = vpop.permute.xlu1 %639 }
 0xdcd   :  { %1379 = vmatmul.mubr.msk.f32.vlgmr.msra.gmra.mrb[6].mxu0 %vm115_vm3, %v640_v51  ;;  %v971_v51 = vld [vmem:[%s1784_s1] sm:$0x3] }
 0xdce   :  { %1474 = vmatpush3.bf16.msra.mxu0 %v1599_v4  ;;  %1400 = vmatprep.mubr.msk.f32.mxu0 %vm1560_vm2, %v1561_v8 }
 0xdcf   :  { %1475 = vmatprep.subr.bf16.mxu0 %v1559_v0 }
 0xdd2   :  { %1477 = vmatpush3.bf16.msra.mxu0 %v1620_v10  ;;  %v725_v10 = vrot.slane %v631_v47, 6  ;;  %v962_v47 = vld [vmem:[%s1783_s3 + $0x20] sm:$0xf] }
 0xdd3   :  { %1478 = vmatprep.subr.bf16.mxu0 %v1559_v0 }
 0xea0   :  { %v709_v52 = vpop.f32.mrb[6].mxu0 }
 0xea1   :  { %v714_v53 = vrot.slane %v709_v52, 6  ;;  %v1380_v54 = vpop.f32.mrb[7].mxu0  ;;  %v1482_v52 = vpack.c.bf16 %v961_v50, %v960_v49 }
 0xea3   :  { %v716_v55 = vadd.f32 %v714_v53, %v1642_v13 }
 0xea5   :  { %1535 = vtanh.f32 %v716_v55  ;;  %v1242_v57 = vmul.f32 -1.442695, %v716_v55 }
 0xea7   :  { %1537 = vpow2.f32 %v1242_v57 }
 0xeaf   :  { %v1536_v56 = vpop.eup %1535 }
 0xeb0   :  { %729 = vrot.lane.b32.xlu0 %v1536_v56, %s1562_s30 }
 0xeb1   :  { %v1538_v4 = vpop.eup %1537 }
 0xeb2   :  { %v720_v58 = vadd.f32 1.0, %v1538_v4 }
 0xeb4   :  { %1539 = vrcp.f32 %v720_v58 }
 0xebe   :  { %v1540_v59 = vpop.eup %1539 }
 0xebf   :  { %v727_v62 = vmul.f32 %v1540_v59, %v725_v10  ;;  %v967_v10 = vld [vmem:[%s1783_s3 + $0x48] sm:$0xff] }
 0xf22   :  { %v730_v60 = vpop.permute.xlu0 %729 }
 0xf23   :  { %v732_v61 = vmul.f32 %v1540_v59, %v730_v60 }
 0xf25   :  { %734 = vrot.lane.b32.xlu1 %v732_v61, %s1563_s2  ;;  %v966_v61 = vld [vmem:[%s1783_s3 + $0x40] sm:$0xff] }
 0xf97   :  { %v735_v63 = vpop.permute.xlu1 %734 }
 0xf98   :  { %v737_v1 = vadd.f32 %v735_v63, %v727_v62  ;;  %v1488_v62 = vpack.c.bf16 %v967_v10, %v966_v61  ;;  %v1250_v63 = vld [vmem:[%s1783_s3 + $0x28] ss:$0 sm:$0xff] }
 0xf9a   :  { %1541 = vtanh.f32 %v737_v1  ;;  %v832_v23 = vrot.slane %v737_v1, 6 }
 0xfa4   :  { %v1542_v2 = vpop.eup %1541 }
 0xfa5   :  { %740 = vrot.lane.b32.xlu0 %v1542_v2, %s1562_s30 }
0x1017   :  { %v741_v3 = vpop.permute.xlu0 %740 }
0x1018   :  { %v743_v5 = vmul.f32 %v1540_v59, %v741_v3  ;;  %v965_v59 = vld [vmem:[%s1783_s3 + $0x38] sm:$0xff] }
0x101a   :  { %v745_v6 = vrot.slane %v743_v5, 2 }
0x101c   :  { %746 = vrot.lane.b32.xlu1 %v745_v6, %s1563_s2 }
0x108e   :  { %v747_v7 = vpop.permute.xlu1 %746 }
0x108f   :  { %1390 = vmatmul.mubr.msk.f32.vlgmr.msra.gmra.mrb[6].mxu1 %vm115_vm3, %v747_v7 }
0x1090   :  { %1405 = vmatprep.mubr.msk.f32.mxu1 %vm1560_vm2, %v1561_v8  ;;  %1404 = vmatpush3.msk.msra.mxu1 %vm36_vm0, %v962_v47 }
0x1091   :  { %1484 = vmatprep.subr.bf16.mxu1 %v1559_v0 }
0x1093   :  { %1406 = vmatmul.mubr.msk.f32.vlgmr.msra.gmra.mrb[8].mxu1 %vm29_vm1, %v971_v51 }
0x1094   :  { %1427 = vmatprep.mubr.msk.f32.mxu1 %vm1560_vm2, %v1561_v8 }
0x1162   :  { %v816_v9 = vpop.f32.mrb[6].mxu1 }
0x1163   :  { %v821_v11 = vrot.slane %v816_v9, 4  ;;  %v1391_v12 = vpop.f32.mrb[7].mxu1 }
0x1164   :  { %v1253_v12 = vld [vmem:[%s1783_s3 + $0x58] ss:$0 sm:$0xff] }
0x1165   :  { %v823_v14 = vadd.f32 %v821_v11, %v1642_v13 }
0x1166   :  { %v1044_v57 = vpop.f32.mrb[8].mxu1 }
0x1167   :  { %1543 = vtanh.f32 %v823_v14  ;;  %v1244_v17 = vmul.f32 -1.442695, %v823_v14  ;;  %v1407_v4 = vpop.f32.mrb[9].mxu1 }
0x1169   :  { %1545 = vpow2.f32 %v1244_v17 }
0x1171   :  { %v1544_v16 = vpop.eup %1543 }
0x1172   :  { %836 = vrot.lane.b32.xlu0 %v1544_v16, %s1562_s30 }
0x1173   :  { %v1546_v18 = vpop.eup %1545 }
0x1174   :  { %v827_v19 = vadd.f32 1.0, %v1546_v18  ;;  %v1254_v18 = vld [vmem:[%s1783_s3 + $0x60] ss:$0 sm:$0xff] }
0x1176   :  { %1547 = vrcp.f32 %v827_v19 }
0x1180   :  { %v1548_v20 = vpop.eup %1547 }
0x1181   :  { %v834_v24 = vmul.f32 %v1548_v20, %v832_v23 }
0x11e4   :  { %v837_v21 = vpop.permute.xlu0 %836 }
0x11e5   :  { %v839_v22 = vmul.f32 %v1548_v20, %v837_v21 }
0x11e7   :  { %841 = vrot.lane.b32.xlu1 %v839_v22, %s1563_s2 }
0x1259   :  { %v842_v25 = vpop.permute.xlu1 %841 }
0x125a   :  { %v844_v26 = vadd.f32 %v842_v25, %v834_v24 }
0x125c   :  { %1549 = vtanh.f32 %v844_v26  ;;  %v939_v42 = vrot.slane %v844_v26, 6 }
0x1266   :  { %v1550_v27 = vpop.eup %1549 }
0x1267   :  { %847 = vrot.lane.b32.xlu0 %v1550_v27, %s1562_s30 }
0x12d9   :  { %v848_v28 = vpop.permute.xlu0 %847 }
0x12da   :  { %v850_v29 = vmul.f32 %v1548_v20, %v848_v28 }
0x12dc   :  { %v852_v15 = vrot.slane %v850_v29, 4 }
0x12de   :  { %853 = vrot.lane.b32.xlu1 %v852_v15, %s1563_s2 }
0x1350   :  { %v854_v30 = vpop.permute.xlu1 %853 }
0x1351   :  { %1401 = vmatmul.mubr.msk.f32.vlgmr.msra.gmra.mrb[8].mxu0 %vm115_vm3, %v854_v30 }
0x1352   :  { %1416 = vmatprep.mubr.msk.f32.mxu0 %vm1560_vm2, %v1561_v8  ;;  %v964_v8 = vld [vmem:[%s1783_s3 + $0x30] sm:$0xff] }
0x1353   :  { %v1485_v60 = vpack.c.bf16 %v965_v59, %v964_v8 }
0x1355   :  { %1486 = vmatpush3.bf16.msra.mxu1 %v1485_v60 }
0x1356   :  { %1487 = vmatprep.subr.bf16.mxu1 %v1559_v0 }
0x1359   :  { %1489 = vmatpush3.bf16.msra.mxu1 %v1488_v62 }
0x1424   :  { %v923_v31 = vpop.f32.mrb[8].mxu0 }
0x1425   :  { %v928_v32 = vrot.slane %v923_v31, 2  ;;  %v1402_v33 = vpop.f32.mrb[9].mxu0 }
0x1427   :  { %v930_v34 = vadd.f32 %v928_v32, %v1642_v13  ;;  %v958_v13 = vld [vmem:[%s1783_s3] sm:$0xff] }
0x1428   :  { %v1479_v48 = vpack.c.bf16 %v959_v46, %v958_v13 }
0x1429   :  { %1551 = vtanh.f32 %v930_v34  ;;  %v1246_v36 = vmul.f32 -1.442695, %v930_v34 }
0x142a   :  { %1480 = vmatpush3.bf16.msra.mxu0 %v1479_v48 }
0x142b   :  { %1553 = vpow2.f32 %v1246_v36  ;;  %1481 = vmatprep.subr.bf16.mxu0 %v1559_v0  ;;  %v1251_v0 = vld [vmem:[%s1783_s3 + $0x50] ss:$0 sm:$0xff] }
0x142e   :  { %1483 = vmatpush3.bf16.msra.mxu0 %v1482_v52 }
0x1433   :  { %v1552_v35 = vpop.eup %1551 }
0x1434   :  { %943 = vrot.lane.b32.xlu0 %v1552_v35, %s1562_s30 }
0x1435   :  { %v1554_v37 = vpop.eup %1553 }
0x1436   :  { %v934_v38 = vadd.f32 1.0, %v1554_v37 }
0x1438   :  { %1555 = vrcp.f32 %v934_v38 }
0x1442   :  { %v1556_v39 = vpop.eup %1555 }
0x1443   :  { %v941_v43 = vmul.f32 %v1556_v39, %v939_v42 }
0x14a6   :  { %v944_v40 = vpop.permute.xlu0 %943 }
0x14a7   :  { %v946_v41 = vmul.f32 %v1556_v39, %v944_v40 }
0x14a9   :  { %948 = vrot.lane.b32.xlu1 %v946_v41, %s1563_s2 }
0x151b   :  { %v949_v44 = vpop.permute.xlu1 %948 }
0x151c   :  { %v951_v45 = vadd.f32 %v949_v44, %v941_v43 }
0x151e   :  { %1557 = vtanh.f32 %v951_v45 }
0x1528   :  { %v1558_v53 = vpop.eup %1557 }
0x1529   :  { %954 = vrot.lane.b32.xlu0 %v1558_v53, %s1562_s30 }
0x159b   :  { %v955_v54 = vpop.permute.xlu0 %954 }
0x159c   :  { %v957_v55 = vmul.f32 %v1556_v39, %v955_v54 }
0x159e   :  { %v1049_v56 = vrot.slane %v957_v55, 6 }
0x15a0   :  { %1050 = vrot.lane.b32.xlu1 %v1049_v56, %s1563_s2 }
0x1612   :  { %v1051_v58 = vpop.permute.xlu1 %1050 }
0x1613   :  { %1417 = vmatmul.mubr.msk.f32.vlgmr.msra.gmra.mrb[10].mxu0 %vm115_vm3, %v1051_v58 }
0x16e6   :  { %v1120_v1 = vpop.f32.mrb[10].mxu0 }
0x16e7   :  { %v1121_v2 = vadd.f32 %v1120_v1, %v1044_v57  ;;  %v1418_v3 = vpop.f32.mrb[11].mxu0 }
0x16e9   :  { %v1128_v5 = vadd.f32 %v1250_v63, %v1121_v2 }
0x16eb   :  { %v1129_v6 = vmax.f32 %v1128_v5, 0.0 }
0x16ed   :  { %1428 = vmatmul.mubr.msk.f32.vlgmr.msra.gmra.mrb[10].mxu1 %vm115_vm3, %v1129_v6 }
0x17c0   :  { %v1203_v7 = vpop.f32.mrb[10].mxu1 }
0x17c1   :  { %v1204_v9 = vadd.f32 %v1251_v0, %v1203_v7  ;;  %v1429_v11 = vpop.f32.mrb[11].mxu1 }
0x17c3   :  { %v1207_v14 = vmax.f32 %v1204_v9, 0.0 }
0x17c5   :  { %v1212_v16 = vmul.f32 %v1253_v12, %v1207_v14 }
0x17c7   :  { %v1214_v17 = vsel %vm1213_vm4, %v1212_v16, 0.0 }
0x17c8   :  { %1215 = vadd.xlane.f32.xlu0 %v1214_v17 }
0x1855   :  { %v1216_v19 = vpop.xlane.xlu0 %1215 }
0x1856   :  { %v1221_v20 = vadd.f32 %v1254_v18, %v1216_v19 }
0x1858   :  { %1223 = vst.msk [vmem:[%s1785_s4] sm:$0x3] %vm1222_vm5, %v1221_v20 }

</bundles_post_ra>
